<compile_context>
chip_gen: v7x
topology: tpu7x:2x2x1
jax: 0.10.0
libtpu: 0.0.40
codegen_flags: <defaults>
</compile_context>

<pallas_src>
import functools
import math

import jax
import jax.numpy as jnp
from jax.experimental import pallas as pl
from jax.experimental.pallas import tpu as pltpu

_LANE = 128
_SQRT_HALF = 0.7071067811865476


def _round_up(x, m):
    return (x + m - 1) // m * m


def _erf_approx(x):
    # Abramowitz & Stegun 7.1.26 (max abs error ~1.5e-7; exact at f32 scale).
    # Implemented with only exp / mul / add / where so it always lowers in Mosaic.
    a1, a2, a3, a4, a5 = (0.254829592, -0.284496736, 1.421413741,
                          -1.453152027, 1.061405429)
    p = 0.3275911
    ax = jnp.abs(x)
    t = 1.0 / (1.0 + p * ax)
    poly = t * (a1 + t * (a2 + t * (a3 + t * (a4 + t * a5))))
    y = 1.0 - poly * jnp.exp(-ax * ax)
    return jnp.where(x >= 0.0, y, -y)


def _gelu_exact(x):
    # nn.GELU() default = exact erf-based GELU.
    return 0.5 * x * (1.0 + _erf_approx(x * _SQRT_HALF))


def _gelu_tanh(x):
    # Documented fast path: tanh approximation routes through the (otherwise
    # idle) EUP slot instead of a long VPU polynomial.  ~1e-4 numerics change.
    return jax.nn.gelu(x, approximate=True)


def _mlp_kernel(z_ref, w1_ref, b1_ref, w2_ref, b2_ref, w3_ref, b3_ref, o_ref,
                xpad_ref, *, d, approximate_gelu):
    act = _gelu_tanh if approximate_gelu else _gelu_exact
    dp = xpad_ref.shape[1]

    if d == dp:
        x = z_ref[...].astype(jnp.bfloat16)
    else:
        # In-kernel lane pad D -> Dp: zero the pad lanes once (they stay zero
        # across grid steps), overwrite the live D lanes every step.  Avoids a
        # padded HBM copy of z in the wrapper.
        @pl.when(pl.program_id(0) == 0)
        def _():
            xpad_ref[...] = jnp.zeros_like(xpad_ref)

        xpad_ref[:, :d] = z_ref[...]
        x = xpad_ref[...].astype(jnp.bfloat16)

    # fc_layer_1 + GELU (bf16 MXU feed, f32 accumulate, bias/activation in f32)
    h = jnp.dot(x, w1_ref[...], preferred_element_type=jnp.float32) + b1_ref[...]
    h = act(h)

    # fc_layer_2 + GELU
    h = jnp.dot(h.astype(jnp.bfloat16), w2_ref[...],
                preferred_element_type=jnp.float32) + b2_ref[...]
    h = act(h)

    # fc_output_layer (f32 weights for tight parity; no activation)
    logits = jnp.dot(h, w3_ref[...], preferred_element_type=jnp.float32) + b3_ref[...]
    o_ref[...] = logits.astype(o_ref.dtype)


def prepare_params(params):
    """Pad (to lane multiples) and cast the weights ONCE.

    Call at init / checkpoint-load time, not per forward call — this is the
    only place the raw f32 weights are touched.
    """
    D = params["w1"].shape[0]
    C = params["w3"].shape[1]
    Dp = _round_up(D, _LANE)
    Cp = _round_up(C, _LANE)

    f32, bf16 = jnp.float32, jnp.bfloat16

    def pad2(a, rows, cols, dtype):
        a = jnp.asarray(a, f32)
        return jnp.pad(a, ((0, rows - a.shape[0]), (0, cols - a.shape[1]))).astype(dtype)

    return {
        "w1": pad2(params["w1"], Dp, Dp, bf16),
        "b1": pad2(params["b1"].reshape(1, D), 1, Dp, f32),
        "w2": pad2(params["w2"], Dp, Dp, bf16),
        "b2": pad2(params["b2"].reshape(1, D), 1, Dp, f32),
        "w3": pad2(params["w3"], Dp, Cp, f32),   # final layer kept f32
        "b3": pad2(params["b3"].reshape(1, C), 1, Cp, f32),
        "latent_dim": D,
        "n_classes": C,
    }


def latent_classifier_forward(z, prepared, *, block_b=None,
                              approximate_gelu=False, core_parallel=False,
                              out_dtype=jnp.float32):
    """z: (B, latent_dim) f32; prepared: output of prepare_params().

    Returns (B, n_classes) logits (out_dtype, default f32).
    """
    B, D = z.shape
    assert prepared["latent_dim"] == D, (prepared["latent_dim"], D)
    C = prepared["n_classes"]
    Dp = prepared["w1"].shape[0]
    Cp = prepared["w3"].shape[1]

    # ---- batch tile: one fat block (fewer grid steps) --------------------
    if block_b is None:
        block_b = min(1024, _round_up(B, 8))
        if core_parallel and B > 8:
            # give each of the two v7x TensorCores >=1 full tile
            block_b = min(block_b, _round_up(pl.cdiv(B, 2), 8))
    block_b = max(8, _round_up(int(block_b), 8))
    Bp = _round_up(B, block_b)
    grid = (Bp // block_b,)

    zp = z.astype(jnp.float32)
    if Bp != B:
        zp = jnp.pad(zp, ((0, Bp - B), (0, 0)))  # rows only; lane pad is in-kernel

    full = lambda i: (0, 0)  # grid-invariant weights/biases stay resident

    # ---- explicit VMEM budget (v5e default scoped limit is 16 MiB; v7x has
    #      only 64 MiB VMEM per TC so cap at 48 MiB) --------------------------
    tile_bytes = 2 * (block_b * D * 4 + block_b * Cp * 4) + block_b * Dp * 4
    weight_bytes = 2 * (2 * Dp * Dp * 2 + Dp * Cp * 4 + 2 * Dp * 4 + Cp * 4)
    vmem_limit = int(min(48 << 20, max(16 << 20, 2 * (tile_bytes + weight_bytes))))

    # Advisory cost with the padded dims actually executed.
    cost = pl.CostEstimate(
        flops=2 * Bp * (Dp * Dp + Dp * Dp + Dp * Cp),
        transcendentals=2 * Bp * Dp,
        bytes_accessed=(Bp * D * 4 + Bp * Cp * 4
                        + 2 * Dp * Dp * 2 + Dp * Cp * 4 + 2 * Dp * 4 + Cp * 4),
    )

    batch_sem = pltpu.CORE_PARALLEL if core_parallel else pltpu.PARALLEL

    out = pl.pallas_call(
        functools.partial(_mlp_kernel, d=D, approximate_gelu=approximate_gelu),
        out_shape=jax.ShapeDtypeStruct((Bp, Cp), out_dtype),
        grid_spec=pltpu.PrefetchScalarGridSpec(
            num_scalar_prefetch=0,
            grid=grid,
            in_specs=[
                pl.BlockSpec((block_b, D), lambda i: (i, 0)),  # z (unpadded lanes)
                pl.BlockSpec((Dp, Dp), full),                  # w1 (bf16)
                pl.BlockSpec((1, Dp), full),                   # b1
                pl.BlockSpec((Dp, Dp), full),                  # w2 (bf16)
                pl.BlockSpec((1, Dp), full),                   # b2
                pl.BlockSpec((Dp, Cp), full),                  # w3 (f32)
                pl.BlockSpec((1, Cp), full),                   # b3
            ],
            out_specs=pl.BlockSpec((block_b, Cp), lambda i: (i, 0)),  # lane-dense
            scratch_shapes=[pltpu.VMEM((block_b, Dp), jnp.float32)],  # in-kernel pad
        ),
        compiler_params=pltpu.CompilerParams(
            dimension_semantics=(batch_sem,),
            vmem_limit_bytes=vmem_limit,
        ),
        cost_estimate=cost,
    )(zp, prepared["w1"], prepared["b1"], prepared["w2"], prepared["b2"],
      prepared["w3"], prepared["b3"])

    # In a larger model, fuse this slice into the consumer instead.
    return out[:B, :C]


def init_params(key, latent_dim, n_classes):
    """PyTorch-style uniform(-1/sqrt(fan_in), 1/sqrt(fan_in)) init."""
    ks = jax.random.split(key, 6)

    def lin(kw, kb, fan_in, fan_out):
        bound = 1.0 / math.sqrt(fan_in)
        w = jax.random.uniform(kw, (fan_in, fan_out), jnp.float32, -bound, bound)
        b = jax.random.uniform(kb, (fan_out,), jnp.float32, -bound, bound)
        return w, b

    w1, b1 = lin(ks[0], ks[1], latent_dim, latent_dim)
    w2, b2 = lin(ks[2], ks[3], latent_dim, latent_dim)
    w3, b3 = lin(ks[4], ks[5], latent_dim, n_classes)
    return {"w1": w1, "b1": b1, "w2": w2, "b2": b2, "w3": w3, "b3": b3}


def _reference_f32(z, p):
    def gelu(x):
        return 0.5 * x * (1.0 + jax.lax.erf(x * _SQRT_HALF))

    h = gelu(z @ p["w1"] + p["b1"])
    h = gelu(h @ p["w2"] + p["b2"])
    return h @ p["w3"] + p["b3"]


if __name__ == "__main__":
    latent_dim = 32
    n_classes = 10
    batch = 8

    key = jax.random.PRNGKey(0)
    k_z, k_p = jax.random.split(key)
    z = jax.random.normal(k_z, (batch, latent_dim), jnp.float32)
    raw_params = init_params(k_p, latent_dim, n_classes)

    prepared = prepare_params(raw_params)  # once, outside the forward path

    logits = latent_classifier_forward(z, prepared)
    logits = jax.block_until_ready(logits)

    ref = _reference_f32(z, raw_params)
    assert logits.shape == (batch, n_classes), logits.shape
    # bf16 MXU feed for the first two layers perturbs numerics slightly vs the
    # pure f32 PyTorch path; final layer is f32, exact-erf GELU is the default.
    assert jnp.allclose(logits, ref, atol=2e-2, rtol=2e-2), (
        "mismatch vs reference, max abs diff = "
        f"{float(jnp.max(jnp.abs(logits - ref)))}")

    print("KERNEL_OK")
</pallas_src>

<mosaic_0001>
module attributes {stable_mosaic.version = 11 : i64} {
  func.func @_mlp_kernel(%arg0: i32, %arg1: memref<8x32xf32, #tpu.memory_space<vmem>>, %arg2: memref<128x128xbf16, #tpu.memory_space<vmem>>, %arg3: memref<1x128xf32, #tpu.memory_space<vmem>>, %arg4: memref<128x128xbf16, #tpu.memory_space<vmem>>, %arg5: memref<1x128xf32, #tpu.memory_space<vmem>>, %arg6: memref<128x128xf32, #tpu.memory_space<vmem>>, %arg7: memref<1x128xf32, #tpu.memory_space<vmem>>, %arg8: memref<8x128xf32, #tpu.memory_space<vmem>>, %arg9: memref<8x128xf32, #tpu.memory_space<vmem>>) attributes {dimension_semantics = [#tpu.dimension_semantics<parallel>], iteration_bounds = array<i64: 1>, scalar_prefetch = 0 : i64, scratch_operands = 1 : i64, tpu.core_type = #tpu.core_type<tc>, window_params = [{transform_indices = @transform_0, window_bounds = array<i64: 8, 32>}, {pipeline_mode = #tpu.pipeline_mode<synchronous>, transform_indices = @transform_1, window_bounds = array<i64: 128, 128>}, {pipeline_mode = #tpu.pipeline_mode<synchronous>, transform_indices = @transform_2, window_bounds = array<i64: 1, 128>}, {pipeline_mode = #tpu.pipeline_mode<synchronous>, transform_indices = @transform_3, window_bounds = array<i64: 128, 128>}, {pipeline_mode = #tpu.pipeline_mode<synchronous>, transform_indices = @transform_4, window_bounds = array<i64: 1, 128>}, {pipeline_mode = #tpu.pipeline_mode<synchronous>, transform_indices = @transform_5, window_bounds = array<i64: 128, 128>}, {pipeline_mode = #tpu.pipeline_mode<synchronous>, transform_indices = @transform_6, window_bounds = array<i64: 1, 128>}, {transform_indices = @transform_7, window_bounds = array<i64: 8, 128>}]} {
    %c0_i32 = arith.constant 0 : i32
    %0 = arith.cmpi eq, %arg0, %c0_i32 : i32
    %1 = arith.extui %0 : i1 to i32
    %c0_i32_0 = arith.constant 0 : i32
    %2 = arith.cmpi ne, %1, %c0_i32_0 : i32
    scf.if %2 {
      %cst_52 = arith.constant 0.000000e+00 : f32
      %104 = vector.broadcast %cst_52 : f32 to vector<8x128xf32>
      %c0_53 = arith.constant 0 : index
      %c0_54 = arith.constant 0 : index
      %105 = vector.load %arg9[%c0_53, %c0_54] : memref<8x128xf32, #tpu.memory_space<vmem>>, vector<8x128xf32>
      tpu.vector_store %arg9[%c0_53, %c0_54], %104 {strides = array<i32>} : memref<8x128xf32, #tpu.memory_space<vmem>>, vector<8x128xf32>,
    } else {
    }
    %c0 = arith.constant 0 : index
    %c0_1 = arith.constant 0 : index
    %3 = vector.load %arg1[%c0, %c0_1] : memref<8x32xf32, #tpu.memory_space<vmem>>, vector<8x32xf32>
    %c0_2 = arith.constant 0 : index
    %c0_3 = arith.constant 0 : index
    %4 = vector.load %arg9[%c0_2, %c0_3] : memref<8x128xf32, #tpu.memory_space<vmem>>, vector<8x32xf32>
    tpu.vector_store %arg9[%c0_2, %c0_3], %3 {strides = array<i32>} : memref<8x128xf32, #tpu.memory_space<vmem>>, vector<8x32xf32>,
    %c0_4 = arith.constant 0 : index
    %c0_5 = arith.constant 0 : index
    %5 = vector.load %arg9[%c0_4, %c0_5] : memref<8x128xf32, #tpu.memory_space<vmem>>, vector<8x128xf32>
    %6 = arith.truncf %5 : vector<8x128xf32> to vector<8x128xbf16>
    %c0_6 = arith.constant 0 : index
    %c0_7 = arith.constant 0 : index
    %7 = vector.load %arg2[%c0_6, %c0_7] : memref<128x128xbf16, #tpu.memory_space<vmem>>, vector<128x128xbf16>
    %cst = arith.constant dense<0.000000e+00> : vector<8x128xf32>
    %8 = tpu.matmul %6, %7, %cst {dimension_numbers = #tpu.dot_dimension_numbers<[1], [0], [0], [1], [0, 0, 1, 1], [], []>} : vector<8x128xbf16>, vector<128x128xbf16>, vector<8x128xf32> -> vector<8x128xf32>
    %c0_8 = arith.constant 0 : index
    %c0_9 = arith.constant 0 : index
    %9 = vector.load %arg3[%c0_8, %c0_9] : memref<1x128xf32, #tpu.memory_space<vmem>>, vector<1x128xf32>
    %10 = vector.broadcast %9 : vector<1x128xf32> to vector<8x128xf32>
    %11 = arith.addf %8, %10 : vector<8x128xf32>
    %cst_10 = arith.constant 5.000000e-01 : f32
    %12 = vector.broadcast %cst_10 : f32 to vector<8x128xf32>
    %13 = arith.mulf %12, %11 : vector<8x128xf32>
    %cst_11 = arith.constant 0.707106769 : f32
    %14 = vector.broadcast %cst_11 : f32 to vector<8x128xf32>
    %15 = arith.mulf %11, %14 : vector<8x128xf32>
    %16 = math.absf %15 : vector<8x128xf32>
    %cst_12 = arith.constant 0.327591091 : f32
    %17 = vector.broadcast %cst_12 : f32 to vector<8x128xf32>
    %18 = arith.mulf %17, %16 : vector<8x128xf32>
    %cst_13 = arith.constant 1.000000e+00 : f32
    %19 = vector.broadcast %cst_13 : f32 to vector<8x128xf32>
    %20 = arith.addf %19, %18 : vector<8x128xf32>
    %cst_14 = arith.constant 1.000000e+00 : f32
    %21 = vector.broadcast %cst_14 : f32 to vector<8x128xf32>
    %22 = arith.divf %21, %20 : vector<8x128xf32>
    %cst_15 = arith.constant 1.06140542 : f32
    %23 = vector.broadcast %cst_15 : f32 to vector<8x128xf32>
    %24 = arith.mulf %22, %23 : vector<8x128xf32>
    %cst_16 = arith.constant -1.45315206 : f32
    %25 = vector.broadcast %cst_16 : f32 to vector<8x128xf32>
    %26 = arith.addf %25, %24 : vector<8x128xf32>
    %27 = arith.mulf %22, %26 : vector<8x128xf32>
    %cst_17 = arith.constant 1.42141378 : f32
    %28 = vector.broadcast %cst_17 : f32 to vector<8x128xf32>
    %29 = arith.addf %28, %27 : vector<8x128xf32>
    %30 = arith.mulf %22, %29 : vector<8x128xf32>
    %cst_18 = arith.constant -0.284496725 : f32
    %31 = vector.broadcast %cst_18 : f32 to vector<8x128xf32>
    %32 = arith.addf %31, %30 : vector<8x128xf32>
    %33 = arith.mulf %22, %32 : vector<8x128xf32>
    %cst_19 = arith.constant 0.254829586 : f32
    %34 = vector.broadcast %cst_19 : f32 to vector<8x128xf32>
    %35 = arith.addf %34, %33 : vector<8x128xf32>
    %36 = arith.mulf %22, %35 : vector<8x128xf32>
    %cst_20 = arith.constant 0.000000e+00 : f32
    %37 = vector.broadcast %cst_20 : f32 to vector<8x128xf32>
    %38 = arith.subf %37, %16 : vector<8x128xf32>
    %39 = arith.mulf %38, %16 : vector<8x128xf32>
    %40 = math.exp %39 : vector<8x128xf32>
    %41 = arith.mulf %36, %40 : vector<8x128xf32>
    %cst_21 = arith.constant 1.000000e+00 : f32
    %42 = vector.broadcast %cst_21 : f32 to vector<8x128xf32>
    %43 = arith.subf %42, %41 : vector<8x128xf32>
    %cst_22 = arith.constant 0.000000e+00 : f32
    %44 = vector.broadcast %cst_22 : f32 to vector<8x128xf32>
    %45 = arith.cmpf oge, %15, %44 : vector<8x128xf32>
    %cst_23 = arith.constant 0.000000e+00 : f32
    %46 = vector.broadcast %cst_23 : f32 to vector<8x128xf32>
    %47 = arith.subf %46, %43 : vector<8x128xf32>
    %48 = arith.select %45, %43, %47 : vector<8x128xi1>, vector<8x128xf32>
    %cst_24 = arith.constant 1.000000e+00 : f32
    %49 = vector.broadcast %cst_24 : f32 to vector<8x128xf32>
    %50 = arith.addf %49, %48 : vector<8x128xf32>
    %51 = arith.mulf %13, %50 : vector<8x128xf32>
    %52 = arith.truncf %51 : vector<8x128xf32> to vector<8x128xbf16>
    %c0_25 = arith.constant 0 : index
    %c0_26 = arith.constant 0 : index
    %53 = vector.load %arg4[%c0_25, %c0_26] : memref<128x128xbf16, #tpu.memory_space<vmem>>, vector<128x128xbf16>
    %cst_27 = arith.constant dense<0.000000e+00> : vector<8x128xf32>
    %54 = tpu.matmul %52, %53, %cst_27 {dimension_numbers = #tpu.dot_dimension_numbers<[1], [0], [0], [1], [0, 0, 1, 1], [], []>} : vector<8x128xbf16>, vector<128x128xbf16>, vector<8x128xf32> -> vector<8x128xf32>
    %c0_28 = arith.constant 0 : index
    %c0_29 = arith.constant 0 : index
    %55 = vector.load %arg5[%c0_28, %c0_29] : memref<1x128xf32, #tpu.memory_space<vmem>>, vector<1x128xf32>
    %56 = vector.broadcast %55 : vector<1x128xf32> to vector<8x128xf32>
    %57 = arith.addf %54, %56 : vector<8x128xf32>
    %cst_30 = arith.constant 5.000000e-01 : f32
    %58 = vector.broadcast %cst_30 : f32 to vector<8x128xf32>
    %59 = arith.mulf %58, %57 : vector<8x128xf32>
    %cst_31 = arith.constant 0.707106769 : f32
    %60 = vector.broadcast %cst_31 : f32 to vector<8x128xf32>
    %61 = arith.mulf %57, %60 : vector<8x128xf32>
    %62 = math.absf %61 : vector<8x128xf32>
    %cst_32 = arith.constant 0.327591091 : f32
    %63 = vector.broadcast %cst_32 : f32 to vector<8x128xf32>
    %64 = arith.mulf %63, %62 : vector<8x128xf32>
    %cst_33 = arith.constant 1.000000e+00 : f32
    %65 = vector.broadcast %cst_33 : f32 to vector<8x128xf32>
    %66 = arith.addf %65, %64 : vector<8x128xf32>
    %cst_34 = arith.constant 1.000000e+00 : f32
    %67 = vector.broadcast %cst_34 : f32 to vector<8x128xf32>
    %68 = arith.divf %67, %66 : vector<8x128xf32>
    %cst_35 = arith.constant 1.06140542 : f32
    %69 = vector.broadcast %cst_35 : f32 to vector<8x128xf32>
    %70 = arith.mulf %68, %69 : vector<8x128xf32>
    %cst_36 = arith.constant -1.45315206 : f32
    %71 = vector.broadcast %cst_36 : f32 to vector<8x128xf32>
    %72 = arith.addf %71, %70 : vector<8x128xf32>
    %73 = arith.mulf %68, %72 : vector<8x128xf32>
    %cst_37 = arith.constant 1.42141378 : f32
    %74 = vector.broadcast %cst_37 : f32 to vector<8x128xf32>
    %75 = arith.addf %74, %73 : vector<8x128xf32>
    %76 = arith.mulf %68, %75 : vector<8x128xf32>
    %cst_38 = arith.constant -0.284496725 : f32
    %77 = vector.broadcast %cst_38 : f32 to vector<8x128xf32>
    %78 = arith.addf %77, %76 : vector<8x128xf32>
    %79 = arith.mulf %68, %78 : vector<8x128xf32>
    %cst_39 = arith.constant 0.254829586 : f32
    %80 = vector.broadcast %cst_39 : f32 to vector<8x128xf32>
    %81 = arith.addf %80, %79 : vector<8x128xf32>
    %82 = arith.mulf %68, %81 : vector<8x128xf32>
    %cst_40 = arith.constant 0.000000e+00 : f32
    %83 = vector.broadcast %cst_40 : f32 to vector<8x128xf32>
    %84 = arith.subf %83, %62 : vector<8x128xf32>
    %85 = arith.mulf %84, %62 : vector<8x128xf32>
    %86 = math.exp %85 : vector<8x128xf32>
    %87 = arith.mulf %82, %86 : vector<8x128xf32>
    %cst_41 = arith.constant 1.000000e+00 : f32
    %88 = vector.broadcast %cst_41 : f32 to vector<8x128xf32>
    %89 = arith.subf %88, %87 : vector<8x128xf32>
    %cst_42 = arith.constant 0.000000e+00 : f32
    %90 = vector.broadcast %cst_42 : f32 to vector<8x128xf32>
    %91 = arith.cmpf oge, %61, %90 : vector<8x128xf32>
    %cst_43 = arith.constant 0.000000e+00 : f32
    %92 = vector.broadcast %cst_43 : f32 to vector<8x128xf32>
    %93 = arith.subf %92, %89 : vector<8x128xf32>
    %94 = arith.select %91, %89, %93 : vector<8x128xi1>, vector<8x128xf32>
    %cst_44 = arith.constant 1.000000e+00 : f32
    %95 = vector.broadcast %cst_44 : f32 to vector<8x128xf32>
    %96 = arith.addf %95, %94 : vector<8x128xf32>
    %97 = arith.mulf %59, %96 : vector<8x128xf32>
    %c0_45 = arith.constant 0 : index
    %c0_46 = arith.constant 0 : index
    %98 = vector.load %arg6[%c0_45, %c0_46] : memref<128x128xf32, #tpu.memory_space<vmem>>, vector<128x128xf32>
    %cst_47 = arith.constant dense<0.000000e+00> : vector<8x128xf32>
    %99 = tpu.matmul %97, %98, %cst_47 {dimension_numbers = #tpu.dot_dimension_numbers<[1], [0], [0], [1], [0, 0, 1, 1], [], []>} : vector<8x128xf32>, vector<128x128xf32>, vector<8x128xf32> -> vector<8x128xf32>
    %c0_48 = arith.constant 0 : index
    %c0_49 = arith.constant 0 : index
    %100 = vector.load %arg7[%c0_48, %c0_49] : memref<1x128xf32, #tpu.memory_space<vmem>>, vector<1x128xf32>
    %101 = vector.broadcast %100 : vector<1x128xf32> to vector<8x128xf32>
    %102 = arith.addf %99, %101 : vector<8x128xf32>
    %c0_50 = arith.constant 0 : index
    %c0_51 = arith.constant 0 : index
    %103 = vector.load %arg8[%c0_50, %c0_51] : memref<8x128xf32, #tpu.memory_space<vmem>>, vector<8x128xf32>
    tpu.vector_store %arg8[%c0_50, %c0_51], %102 {strides = array<i32>} : memref<8x128xf32, #tpu.memory_space<vmem>>, vector<8x128xf32>,
    return
  }
  func.func @transform_0(%arg0: i32) -> (i32, i32) {
    %c0_i32 = arith.constant 0 : i32
    %c0_i32_0 = arith.constant 0 : i32
    return %arg0, %c0_i32 : i32, i32
  }
  func.func @transform_1(%arg0: i32) -> (i32, i32) {
    %c0_i32 = arith.constant 0 : i32
    %c0_i32_0 = arith.constant 0 : i32
    %c0_i32_1 = arith.constant 0 : i32
    return %c0_i32, %c0_i32_0 : i32, i32
  }
  func.func @transform_2(%arg0: i32) -> (i32, i32) {
    %c0_i32 = arith.constant 0 : i32
    %c0_i32_0 = arith.constant 0 : i32
    %c0_i32_1 = arith.constant 0 : i32
    return %c0_i32, %c0_i32_0 : i32, i32
  }
  func.func @transform_3(%arg0: i32) -> (i32, i32) {
    %c0_i32 = arith.constant 0 : i32
    %c0_i32_0 = arith.constant 0 : i32
    %c0_i32_1 = arith.constant 0 : i32
    return %c0_i32, %c0_i32_0 : i32, i32
  }
  func.func @transform_4(%arg0: i32) -> (i32, i32) {
    %c0_i32 = arith.constant 0 : i32
    %c0_i32_0 = arith.constant 0 : i32
    %c0_i32_1 = arith.constant 0 : i32
    return %c0_i32, %c0_i32_0 : i32, i32
  }
  func.func @transform_5(%arg0: i32) -> (i32, i32) {
    %c0_i32 = arith.constant 0 : i32
    %c0_i32_0 = arith.constant 0 : i32
    %c0_i32_1 = arith.constant 0 : i32
    return %c0_i32, %c0_i32_0 : i32, i32
  }
  func.func @transform_6(%arg0: i32) -> (i32, i32) {
    %c0_i32 = arith.constant 0 : i32
    %c0_i32_0 = arith.constant 0 : i32
    %c0_i32_1 = arith.constant 0 : i32
    return %c0_i32, %c0_i32_0 : i32, i32
  }
  func.func @transform_7(%arg0: i32) -> (i32, i32) {
    %c0_i32 = arith.constant 0 : i32
    %c0_i32_0 = arith.constant 0 : i32
    return %arg0, %c0_i32 : i32, i32
  }
}

</mosaic_0001>

<bundles_post_ra>
// kernel: tpu_custom_call.1
= control target key start
LH: loop header
LB: loop body
LE: loop exit
PB: predicated region body
PF: predicated region fallthrough
CT: control target
= control target key end

     0   :  { %12 = vsyncpa [#allocation4], 0  ;;  %s916_s0 = inlined_call_operand.hbm [shape: f32[8,32], index: 0, kind: input, shape index: {}]   ;;  %s917_s1 = inlined_call_operand.hbm [shape: bf16[128,128], index: 1, kind: input, shape index: {}]   ;;  %s918_s2 = inlined_call_operand.vmem [shape: f32[1,128], index: 2, kind: input, shape index: {}]   ;;  %s919_s3 = inlined_call_operand.hbm [shape: bf16[128,128], index: 3, kind: input, shape index: {}]   ;;  %s920_s4 = inlined_call_operand.vmem [shape: f32[1,128], index: 4, kind: input, shape index: {}]   ;;  %s921_s5 = inlined_call_operand.hbm [shape: f32[128,128], index: 5, kind: input, shape index: {}]   ;;  %s922_s6 = inlined_call_operand.vmem [shape: f32[1,128], index: 6, kind: input, shape index: {}]   ;;  %s923_s7 = inlined_call_operand.hbm [shape: f32[8,128], index: 7, kind: output, shape index: {}]  }
   0x1   :  { %13 = vsyncpa [#allocation7], 0 }
   0x2   :  { %14 = vsyncpa [#allocation10], 0 }
   0x3   :  { %15 = vsyncpa [#allocation5], 0  ;;  %s786_s24 = smov [#allocation6]   ;;  %s668_s28 = scalar_lea.hbm %s917_s1, 1024 }
   0x4   :  { %s31_s25 = sshll.u32 %s786_s24, 4  ;;  %p669_p0 = scmp.ne.s32.totalorder %s917_s1, %s668_s28  ;;  %s32_s25 = int_to_ptr.vmem [resolvable:$true] %s31_s25 }
   0x5   :  { %p672_p1 = scmp.lt.u32.totalorder %s668_s28, %s917_s1 }
   0x7   :  { %p674_p2 = pnand %p672_p1, %p669_p0 }
   0x9   :  { %677 = shalt.err (!%p674_p2)
}
   0xa   :  { %s678_s10 = scalar_lea.vmem %s32_s25, 1024  ;;  %p683_p4 = scmp.lt.s32.totalorder %s32_s25, %s32_s25 }
   0xb   :  { %p679_p3 = scmp.ne.s32.totalorder %s32_s25, %s678_s10  ;;  %p684_p5 = scmp.lt.s32.totalorder %s678_s10, %s678_s10 }
   0xd   :  { %p685_p6 = por %p684_p5, %p683_p4 }
   0xf   :  { %p686_p7 = pnand %p685_p6, %p679_p3 }
  0x11   :  { %689 = shalt.err (!%p686_p7)
}
  0x12   :  { %s787_s11 = smov 64   ;;  %s788_s12 = smov 4  }
  0x13   :  { %37 = dma.hbm_to_vmem [thread:$0]  %s917_s1, 1024, %s32_s25, [#allocation7], %s787_s11, %s787_s11, %s788_s12  }
  0x14   :  { %s789_s15 = smov [#allocation3]   ;;  %s790_s17 = smov [#allocation8]  }
  0x15   :  { %s22_s16 = sshll.u32 %s789_s15, 4  ;;  %s45_s18 = sshll.u32 %s790_s17, 4  ;;  %s23_s16 = int_to_ptr.vmem [resolvable:$true] %s22_s16  ;;  %s46_s18 = int_to_ptr.vmem [resolvable:$true] %s45_s18 }
  0x16   :  { %s690_s21 = scalar_lea.hbm %s916_s0, 128 }
  0x17   :  { %p691_p8 = scmp.ne.s32.totalorder %s916_s0, %s690_s21  ;;  %p694_p9 = scmp.lt.u32.totalorder %s690_s21, %s916_s0 }
  0x19   :  { %p696_p10 = pnand %p694_p9, %p691_p8 }
  0x1b   :  { %699 = shalt.err (!%p696_p10)
}
  0x1c   :  { %s700_s1 = scalar_lea.vmem %s23_s16, 128  ;;  %p705_p12 = scmp.lt.s32.totalorder %s23_s16, %s23_s16 }
  0x1d   :  { %p701_p11 = scmp.ne.s32.totalorder %s23_s16, %s700_s1  ;;  %p706_p13 = scmp.lt.s32.totalorder %s700_s1, %s700_s1 }
  0x1f   :  { %p707_p0 = por %p706_p13, %p705_p12 }
  0x21   :  { %p708_p1 = pnand %p707_p0, %p701_p11 }
  0x23   :  { %711 = shalt.err (!%p708_p1)
}
  0x24   :  { %25 = dma.hbm_to_vmem [thread:$0]  %s916_s0, 128, %s23_s16, [#allocation4]  }
  0x25   :  { %s712_s30 = scalar_lea.hbm %s919_s3, 1024 }
  0x26   :  { %p713_p2 = scmp.ne.s32.totalorder %s919_s3, %s712_s30  ;;  %p716_p3 = scmp.lt.u32.totalorder %s712_s30, %s919_s3 }
  0x28   :  { %p718_p4 = pnand %p716_p3, %p713_p2 }
  0x2a   :  { %721 = shalt.err (!%p718_p4)
}
  0x2b   :  { %s722_s14 = scalar_lea.vmem %s46_s18, 1024  ;;  %p727_p6 = scmp.lt.s32.totalorder %s46_s18, %s46_s18 }
  0x2c   :  { %p723_p5 = scmp.ne.s32.totalorder %s46_s18, %s722_s14  ;;  %p728_p7 = scmp.lt.s32.totalorder %s722_s14, %s722_s14 }
  0x2e   :  { %p729_p8 = por %p728_p7, %p727_p6 }
  0x30   :  { %p730_p9 = pnand %p729_p8, %p723_p5 }
  0x32   :  { %733 = shalt.err (!%p730_p9)
}
  0x33   :  { %51 = dma.hbm_to_vmem [thread:$0]  %s919_s3, 1024, %s46_s18, [#allocation7], %s787_s11, %s787_s11, %s788_s12  }
  0x34   :  { %s791_s16 = smov [#allocation9]   ;;  %s734_s21 = scalar_lea.hbm %s921_s5, 2048 }
  0x35   :  { %s59_s17 = sshll.u32 %s791_s16, 4  ;;  %p735_p10 = scmp.ne.s32.totalorder %s921_s5, %s734_s21  ;;  %s60_s17 = int_to_ptr.vmem [resolvable:$true] %s59_s17 }
  0x36   :  { %p738_p11 = scmp.lt.u32.totalorder %s734_s21, %s921_s5 }
  0x38   :  { %p740_p12 = pnand %p738_p11, %p735_p10 }
  0x3a   :  { %743 = shalt.err (!%p740_p12)
}
  0x3b   :  { %s744_s1 = scalar_lea.vmem %s60_s17, 2048  ;;  %p749_p0 = scmp.lt.s32.totalorder %s60_s17, %s60_s17 }
  0x3c   :  { %p745_p13 = scmp.ne.s32.totalorder %s60_s17, %s744_s1  ;;  %p750_p1 = scmp.lt.s32.totalorder %s744_s1, %s744_s1 }
  0x3e   :  { %p751_p2 = por %p750_p1, %p749_p0 }
  0x40   :  { %p752_p3 = pnand %p751_p2, %p745_p13 }
  0x42   :  { %755 = shalt.err (!%p752_p3)
}
  0x43   :  { %s792_s3 = smov 128   ;;  %s793_s11 = smov 8  }
  0x44   :  { %65 = dma.hbm_to_vmem [thread:$0]  %s921_s5, 2048, %s60_s17, [#allocation10], %s792_s3, %s792_s3, %s793_s11  }
  0x45   :  { %778 = dma.done.wait [#allocation4], 128  }
  0x46   :  { %779 = vsyncadd [#allocation4], 4294967168 }
  0x47   :  { %780 = dma.done.wait [#allocation7], 2048  }
  0x48   :  { %781 = vsyncadd [#allocation7], 4294965248 }
  0x49   :  { %782 = dma.done.wait [#allocation10], 2048  }
  0x4a   :  { %783 = vsyncadd [#allocation10], 4294965248  ;;  %v794_v0 = vmov 0.0   ;;  %vm795_vm0 = vmmov 0   ;;  %v644_v1 = vld [vmem:[#allocation6] sm:$0xff]   ;;  %v645_v2 = vld [vmem:[#allocation6 + $0x8] sm:$0xff]  }
  0x4b   :  { %533 = vmatprep.subr.bf16.mxu0 %v794_v0  ;;  %85 = vst [vmem:[#allocation2] sm:$0xff] %v794_v0  ;;  %549 = vmatprep.mubr.msk.bf16.mxu0 %vm795_vm0, %v794_v0  ;;  %v646_v3 = vld [vmem:[#allocation6 + $0x10] sm:$0xff]   ;;  %vm87_vm1 = vcmask 261120   ;;  %v647_v4 = vld [vmem:[#allocation6 + $0x18] sm:$0xff]   ;;  %v648_v6 = vld [vmem:[#allocation6 + $0x20] sm:$0xff]   ;;  %v796_v55 = vmov 0.0|0.0  }
  0x4c   :  { %553 = vmatprep.subr.bf16.mxu1 %v794_v0  ;;  %569 = vmatprep.mubr.msk.bf16.mxu1 %vm795_vm0, %v794_v0  ;;  %v86_v5 = vld [vmem:[#allocation3] sm:$0xff]  ;;  %v649_v7 = vld [vmem:[#allocation6 + $0x28] sm:$0xff]   ;;  %v650_v8 = vld [vmem:[#allocation6 + $0x30] sm:$0xff]   ;;  %s797_s29 = smov [#allocation11]  }
  0x4d   :  { %534 = vmatpush3.bf16.msra.mxu0 %v644_v1  ;;  %88 = vst.msk [vmem:[#allocation2] sm:$0xff] %vm87_vm1, %v86_v5  ;;  %v651_v9 = vld [vmem:[#allocation6 + $0x38] sm:$0xff]   ;;  %v652_v12 = vld [vmem:[#allocation8] sm:$0xff]   ;;  %v653_v13 = vld [vmem:[#allocation8 + $0x8] sm:$0xff]   ;;  %s468_s30 = sshll.u32 %s797_s29, 4  ;;  %s469_s30 = int_to_ptr.vmem [resolvable:$true] %s468_s30 }
  0x4e   :  { %535 = vmatprep.subr.bf16.mxu0 %v794_v0  ;;  %554 = vmatpush3.bf16.msra.mxu1 %v652_v12  ;;  %v654_v14 = vld [vmem:[#allocation8 + $0x10] sm:$0xff]   ;;  %v655_v15 = vld [vmem:[#allocation8 + $0x18] sm:$0xff]   ;;  %v656_v16 = vld [vmem:[#allocation8 + $0x20] sm:$0xff]   ;;  %s756_s8 = scalar_lea.vmem %s469_s30, 128  ;;  %p761_p5 = scmp.lt.s32.totalorder %s469_s30, %s469_s30 }
  0x4f   :  { %555 = vmatprep.subr.bf16.mxu1 %v794_v0  ;;  %v657_v17 = vld [vmem:[#allocation8 + $0x28] sm:$0xff]   ;;  %v658_v18 = vld [vmem:[#allocation8 + $0x30] sm:$0xff]   ;;  %v659_v19 = vld [vmem:[#allocation8 + $0x38] sm:$0xff]   ;;  %p757_p4 = scmp.ne.s32.totalorder %s469_s30, %s756_s8  ;;  %p762_p6 = scmp.lt.s32.totalorder %s756_s8, %s756_s8 }
  0x50   :  { %v479_v20 = vld [vmem:[%s918_s2] ss:$0 sm:$0xff]  ;;  %v368_v52 = vld [vmem:[#allocation9] sm:$0xff]  ;;  %v369_v53 = vld [vmem:[#allocation9 + $0x8] sm:$0xff] }
  0x51   :  { %536 = vmatpush3.bf16.msra.mxu0 %v645_v2  ;;  %v609_v54 = vpack.c.bf16 %v369_v53, %v368_v52  ;;  %v370_v56 = vld [vmem:[#allocation9 + $0x10] sm:$0xff]  ;;  %v371_v57 = vld [vmem:[#allocation9 + $0x18] sm:$0xff]  ;;  %v372_v59 = vld [vmem:[#allocation9 + $0x20] sm:$0xff]  ;;  %p763_p7 = por %p762_p6, %p761_p5 }
  0x52   :  { %537 = vmatprep.subr.bf16.mxu0 %v794_v0  ;;  %556 = vmatpush3.bf16.msra.mxu1 %v653_v13  ;;  %v612_v58 = vpack.c.bf16 %v371_v57, %v370_v56  ;;  %v373_v60 = vld [vmem:[#allocation9 + $0x28] sm:$0xff]  ;;  %v374_v62 = vld [vmem:[#allocation9 + $0x30] sm:$0xff]  ;;  %v375_v63 = vld [vmem:[#allocation9 + $0x38] sm:$0xff] }
  0x53   :  { %557 = vmatprep.subr.bf16.mxu1 %v794_v0  ;;  %v615_v61 = vpack.c.bf16 %v373_v60, %v372_v59  ;;  %v376_v1 = vld [vmem:[#allocation9 + $0x40] sm:$0xff]  ;;  %v377_v2 = vld [vmem:[#allocation9 + $0x48] sm:$0xff]  ;;  %v379_v5 = vld [vmem:[#allocation9 + $0x58] sm:$0xff]  ;;  %p764_p8 = pnand %p763_p7, %p757_p4 }
  0x54   :  { %v89_v10 = vld [vmem:[#allocation2] sm:$0xff] }
  0x55   :  { %538 = vmatpush3.bf16.msra.mxu0 %v646_v3  ;;  %v90_v11 = vpack.c.bf16 %v89_v10, %v89_v10  ;;  %v621_v3 = vpack.c.bf16 %v377_v2, %v376_v1  ;;  %v382_v10 = vld [vmem:[#allocation9 + $0x70] sm:$0xff] }
  0x56   :  { %539 = vmatprep.subr.bf16.mxu0 %v794_v0  ;;  %558 = vmatpush3.bf16.msra.mxu1 %v654_v14  ;;  %v488_v13 = vld [vmem:[%s920_s4] ss:$0 sm:$0xff] }
  0x57   :  { %559 = vmatprep.subr.bf16.mxu1 %v794_v0 }
  0x59   :  { %540 = vmatpush3.bf16.msra.mxu0 %v647_v4  ;;  %v378_v4 = vld [vmem:[#allocation9 + $0x50] sm:$0xff] }
  0x5a   :  { %541 = vmatprep.subr.bf16.mxu0 %v794_v0  ;;  %560 = vmatpush3.bf16.msra.mxu1 %v655_v15 }
  0x5b   :  { %561 = vmatprep.subr.bf16.mxu1 %v794_v0 }
  0x5d   :  { %542 = vmatpush3.bf16.msra.mxu0 %v648_v6  ;;  %v624_v6 = vpack.c.bf16 %v379_v5, %v378_v4 }
  0x5e   :  { %543 = vmatprep.subr.bf16.mxu0 %v794_v0  ;;  %562 = vmatpush3.bf16.msra.mxu1 %v656_v16 }
  0x5f   :  { %563 = vmatprep.subr.bf16.mxu1 %v794_v0 }
  0x61   :  { %544 = vmatpush3.bf16.msra.mxu0 %v649_v7  ;;  %v380_v7 = vld [vmem:[#allocation9 + $0x60] sm:$0xff] }
  0x62   :  { %545 = vmatprep.subr.bf16.mxu0 %v794_v0  ;;  %564 = vmatpush3.bf16.msra.mxu1 %v657_v17 }
  0x63   :  { %565 = vmatprep.subr.bf16.mxu1 %v794_v0 }
  0x65   :  { %546 = vmatpush3.bf16.msra.mxu0 %v650_v8  ;;  %v381_v8 = vld [vmem:[#allocation9 + $0x68] sm:$0xff] }
  0x66   :  { %547 = vmatprep.subr.bf16.mxu0 %v794_v0  ;;  %566 = vmatpush3.bf16.msra.mxu1 %v658_v18 }
  0x67   :  { %567 = vmatprep.subr.bf16.mxu1 %v794_v0 }
  0x69   :  { %548 = vmatpush3.bf16.msra.mxu0 %v651_v9  ;;  %v627_v9 = vpack.c.bf16 %v381_v8, %v380_v7 }
  0x6a   :  { %568 = vmatpush3.bf16.msra.mxu1 %v659_v19  ;;  %608 = vmatprep.subr.bf16.mxu0 %v796_v55 }
  0x6c   :  { %550 = vmatmul.mubr.bf16.vlgmr.msra.gmra.mrb[0].mxu0 %v90_v11  ;;  %v383_v11 = vld [vmem:[#allocation9 + $0x78] sm:$0xff] }
  0x6d   :  { %605 = vmatprep.mubr.msk.f32.mxu0 %vm795_vm0, %v794_v0  ;;  %610 = vmatpush3.bf16.msra.mxu0 %v609_v54  ;;  %v618_v0 = vpack.c.bf16 %v375_v63, %v374_v62  ;;  %v630_v12 = vpack.c.bf16 %v383_v11, %v382_v10 }
  0x6e   :  { %611 = vmatprep.subr.bf16.mxu0 %v796_v55 }
  0x71   :  { %613 = vmatpush3.bf16.msra.mxu0 %v612_v58 }
  0x72   :  { %614 = vmatprep.subr.bf16.mxu0 %v796_v55 }
  0x75   :  { %616 = vmatpush3.bf16.msra.mxu0 %v615_v61 }
  0x76   :  { %617 = vmatprep.subr.bf16.mxu0 %v796_v55 }
  0x79   :  { %619 = vmatpush3.bf16.msra.mxu0 %v618_v0 }
  0x7a   :  { %620 = vmatprep.subr.bf16.mxu0 %v796_v55 }
  0x7d   :  { %622 = vmatpush3.bf16.msra.mxu0 %v621_v3 }
  0x7e   :  { %623 = vmatprep.subr.bf16.mxu0 %v796_v55 }
  0x81   :  { %625 = vmatpush3.bf16.msra.mxu0 %v624_v6 }
  0x82   :  { %626 = vmatprep.subr.bf16.mxu0 %v796_v55 }
  0x85   :  { %628 = vmatpush3.bf16.msra.mxu0 %v627_v9 }
  0x86   :  { %629 = vmatprep.subr.bf16.mxu0 %v796_v55 }
  0x89   :  { %631 = vmatpush3.bf16.msra.mxu0 %v630_v12 }
 0x13f   :  { %v196_v21 = vpop.f32.mrb[0].mxu0 }
 0x140   :  { %v197_v22 = vadd.f32 %v479_v20, %v196_v21  ;;  %v551_v23 = vpop.f32.mrb[1].mxu0 }
 0x141   :  { %v199_v24 = vpop.f32.mrb[2].mxu0 }
 0x142   :  { %v203_v25 = vmul.f32 0.70710677, %v197_v22  ;;  %v552_v26 = vpop.f32.mrb[3].mxu0  ;;  %v202_v48 = vmul.f32 0.5, %v197_v22 }
 0x144   :  { %v204_v27 = vand.u32 2147483647, %v203_v25  ;;  %vm224_vm2 = vcmp.ge.f32.partialorder %v203_v25, 0.0 }
 0x146   :  { %v205_v28 = vmul.f32 0.3275911, %v204_v27  ;;  %v218_v30 = vsub.f32 0.0, %v204_v27 }
 0x148   :  { %v206_v29 = vadd.f32 1.0, %v205_v28  ;;  %v219_v32 = vmul.f32 %v218_v30, %v204_v27 }
 0x14a   :  { %660 = vrcp.f32 %v206_v29  ;;  %v220_v35 = vmul.f32 1.442695, %v219_v32 }
 0x14c   :  { %662 = vpow2.f32 %v220_v35 }
 0x154   :  { %v661_v31 = vpop.eup %660 }
 0x155   :  { %v209_v33 = vmul.f32 1.0614054, %v661_v31 }
 0x156   :  { %v663_v43 = vpop.eup %662 }
 0x157   :  { %v210_v34 = vadd.f32 -1.4531521, %v209_v33 }
 0x159   :  { %v211_v36 = vmul.f32 %v661_v31, %v210_v34 }
 0x15b   :  { %v212_v37 = vadd.f32 1.4214138, %v211_v36 }
 0x15d   :  { %v213_v38 = vmul.f32 %v661_v31, %v212_v37 }
 0x15f   :  { %v214_v39 = vadd.f32 -0.28449672, %v213_v38 }
 0x161   :  { %v215_v40 = vmul.f32 %v661_v31, %v214_v39 }
 0x163   :  { %v216_v41 = vadd.f32 0.2548296, %v215_v40 }
 0x165   :  { %v217_v42 = vmul.f32 %v661_v31, %v216_v41 }
 0x167   :  { %v222_v44 = vmul.f32 %v663_v43, %v217_v42 }
 0x169   :  { %v223_v45 = vsub.f32 1.0, %v222_v44  ;;  %v497_v44 = vld [vmem:[%s922_s6] ss:$0 sm:$0xff] }
 0x16b   :  { %v225_v46 = vsub.f32 0.0, %v223_v45 }
 0x16d   :  { %v226_v47 = vsel %vm224_vm2, %v223_v45, %v225_v46 }
 0x16e   :  { %v227_v49 = vadd.f32 1.0, %v226_v47 }
 0x170   :  { %v228_v50 = vmul.f32 %v227_v49, %v202_v48 }
 0x172   :  { %v229_v51 = vpack.c.bf16 %v228_v50, %v228_v50 }
 0x174   :  { %570 = vmatmul.mubr.bf16.vlgmr.msra.gmra.mrb[0].mxu1 %v229_v51 }
 0x247   :  { %v335_v14 = vpop.f32.mrb[0].mxu1 }
 0x248   :  { %v336_v15 = vadd.f32 %v488_v13, %v335_v14  ;;  %v571_v16 = vpop.f32.mrb[1].mxu1 }
 0x249   :  { %v338_v17 = vpop.f32.mrb[2].mxu1 }
 0x24a   :  { %v342_v18 = vmul.f32 0.70710677, %v336_v15  ;;  %v572_v19 = vpop.f32.mrb[3].mxu1  ;;  %v341_v41 = vmul.f32 0.5, %v336_v15 }
 0x24c   :  { %v343_v20 = vand.u32 2147483647, %v342_v18  ;;  %vm363_vm3 = vcmp.ge.f32.partialorder %v342_v18, 0.0 }
 0x24e   :  { %v344_v21 = vmul.f32 0.3275911, %v343_v20  ;;  %v357_v23 = vsub.f32 0.0, %v343_v20 }
 0x250   :  { %v345_v22 = vadd.f32 1.0, %v344_v21  ;;  %v358_v25 = vmul.f32 %v357_v23, %v343_v20 }
 0x252   :  { %664 = vrcp.f32 %v345_v22  ;;  %v359_v28 = vmul.f32 1.442695, %v358_v25 }
 0x254   :  { %666 = vpow2.f32 %v359_v28 }
 0x25c   :  { %v665_v24 = vpop.eup %664 }
 0x25d   :  { %v348_v26 = vmul.f32 1.0614054, %v665_v24 }
 0x25e   :  { %v667_v36 = vpop.eup %666 }
 0x25f   :  { %v349_v27 = vadd.f32 -1.4531521, %v348_v26 }
 0x261   :  { %v350_v29 = vmul.f32 %v665_v24, %v349_v27 }
 0x263   :  { %v351_v30 = vadd.f32 1.4214138, %v350_v29 }
 0x265   :  { %v352_v31 = vmul.f32 %v665_v24, %v351_v30 }
 0x267   :  { %v353_v32 = vadd.f32 -0.28449672, %v352_v31 }
 0x269   :  { %v354_v33 = vmul.f32 %v665_v24, %v353_v32 }
 0x26b   :  { %v355_v34 = vadd.f32 0.2548296, %v354_v33 }
 0x26d   :  { %v356_v35 = vmul.f32 %v665_v24, %v355_v34 }
 0x26f   :  { %v361_v37 = vmul.f32 %v667_v36, %v356_v35 }
 0x271   :  { %v362_v38 = vsub.f32 1.0, %v361_v37 }
 0x273   :  { %v364_v39 = vsub.f32 0.0, %v362_v38 }
 0x275   :  { %v365_v40 = vsel %vm363_vm3, %v362_v38, %v364_v39 }
 0x276   :  { %v366_v42 = vadd.f32 1.0, %v365_v40 }
 0x278   :  { %v367_v43 = vmul.f32 %v366_v42, %v341_v41 }
 0x27a   :  { %606 = vmatmul.mubr.f32.vlgmr.msra.gmra.mrb[4].mxu0 %v367_v43 }
 0x34d   :  { %v457_v45 = vpop.f32.mrb[4].mxu0 }
 0x34e   :  { %v458_v46 = vadd.f32 %v497_v44, %v457_v45  ;;  %v607_v47 = vpop.f32.mrb[5].mxu0 }
 0x350   :  { %461 = vst [vmem:[#allocation11] sm:$0xff] %v458_v46 }
 0x351   :  { %767 = shalt.err (!%p764_p8)
}
 0x352   :  { %s768_s13 = scalar_lea.hbm %s923_s7, 128 }
 0x353   :  { %p769_p9 = scmp.ne.s32.totalorder %s923_s7, %s768_s13  ;;  %p772_p10 = scmp.lt.u32.totalorder %s768_s13, %s923_s7 }
 0x355   :  { %p774_p11 = pnand %p772_p10, %p769_p9 }
 0x357   :  { %777 = shalt.err (!%p774_p11)
}
 0x358   :  { %471 = dma.vmem_to_hbm [thread:$0]  %s469_s30, 128, %s923_s7, [#allocation5]  }
 0x359   :  { %784 = dma.done.wait [#allocation5], 128  }
 0x35a   :  { %785 = vsyncadd [#allocation5], 4294967168 }
 0x35b   :  { %475 = vsyncpa [#allocation4], 1 }
 0x35c   :  { %476 = vsyncpa [#allocation7], 1 }
 0x35d   :  { %477 = vsyncpa [#allocation10], 1 }
 0x35e   :  { %478 = vsyncpa [#allocation5], 1 }

</bundles_post_ra>
